<compile_context>
chip_gen: v7x
topology: tpu7x:2x2x1
jax: 0.10.0
libtpu: 0.0.40
codegen_flags: <defaults>
</compile_context>

<pallas_src>
import jax
import jax.numpy as jnp
from jax.experimental import pallas as pl
from jax.experimental.pallas import tpu as pltpu

# f32-accurate matmuls everywhere (fold, reference, kernel) so the
# kernel-vs-reference comparison is tight; negligible cost (memory-bound).
jax.config.update("jax_default_matmul_precision", "highest")

_TB_MAX = 16 * 1024  # max batch lanes per grid step (~1 MiB of x per step)


# ---------------------------------------------------------------------------
# One-time parameter fold (run once per parameter set, outside the hot path)
# ---------------------------------------------------------------------------
def fold_params(params):
    """Fold conv1/conv2/flatten/linear1/linear2 params into one (L, F+4) array.

    Columns:  [0:F]  = W_eff^T   (z1 = W_eff^T @ x^T)
              [F]    = w_min     (column multiplying min_f x[b, f])
              [F+1]  = b_eff     (folded bias)
              [F+2]  = w_l2      (linear2 weight row)
              [F+3]  = b_l2      (linear2 bias, broadcast)
    """
    w_conv1 = params["conv1_w"]          # (C1, 1, 1)
    b_conv1 = params["conv1_b"]          # (C1,)
    w_conv2 = params["conv2_w"]          # (C2, C1, 1)
    b_conv2 = params["conv2_b"]          # (C2,)
    w_lin1 = params["linear1_w"]         # (L, C2*F + 1)
    b_lin1 = params["linear1_b"]         # (L,)
    w_lin2 = params["linear2_w"]         # (1, L)
    b_lin2 = params["linear2_b"]         # (1,)

    C2 = w_conv2.shape[0]
    L, in_feat = w_lin1.shape
    F = (in_feat - 1) // C2

    # h2[b,o,f] = s[o]*x[b,f] + t[o]
    s = w_conv2[:, :, 0] @ w_conv1[:, 0, 0]                  # (C2,)
    t = w_conv2[:, :, 0] @ b_conv1 + b_conv2                 # (C2,)
    wa = w_lin1[:, :C2 * F].reshape(L, C2, F)                # (L, C2, F)

    w_eff_t = jnp.einsum('o,lof->lf', s, wa)                 # (L, F)
    b_eff = b_lin1 + jnp.einsum('o,lof->l', t, wa)           # (L,)
    w_min = w_lin1[:, C2 * F]                                # (L,)
    w_l2 = w_lin2.reshape(L)                                 # (L,)
    b_l2_col = jnp.broadcast_to(b_lin2.reshape(1, 1), (L, 1))

    wp = jnp.concatenate(
        [w_eff_t, w_min[:, None], b_eff[:, None], w_l2[:, None], b_l2_col],
        axis=1).astype(jnp.float32)                          # (L, F+4)
    return wp


# ---------------------------------------------------------------------------
# Batch tile choice (static / trace-time)
# ---------------------------------------------------------------------------
def _choose_batch_tile(B, tb_max=_TB_MAX):
    if B <= 1024:
        return B                                  # single full-dim block
    half = -(-B // 2)                             # ceil(B/2): keep >= 2 blocks
    return min(tb_max, ((half + 127) // 128) * 128)


# ---------------------------------------------------------------------------
# Pallas forward on transposed input (batch in lanes)
# ---------------------------------------------------------------------------
def approx_net_forward_t(x_t, wp, *, tb_max=_TB_MAX):
    """x_t: (F, B) float32 (batch lane-dense). wp: (L, F+4). Returns (1, B)."""
    Fdim, B = x_t.shape
    L, Fp4 = wp.shape
    assert Fp4 == Fdim + 4

    TB = _choose_batch_tile(B, tb_max)
    grid = (pl.cdiv(B, TB),)

    def kernel(xt_ref,   # (F, TB)   VMEM  lane-dense x tile
               wp_ref,   # (L, F+4)  VMEM  resident packed params
               o_ref):   # (1, TB)   VMEM  lane-dense output tile
        xt = xt_ref[...]                                   # (F, TB)
        w = wp_ref[...]                                    # (L, F+4)
        w_t = w[:, :Fdim]                                  # (L, F)
        w_min = w[:, Fdim:Fdim + 1]                        # (L, 1)
        b_eff = w[:, Fdim + 1:Fdim + 2]                    # (L, 1)
        w_l2 = w[:, Fdim + 2:Fdim + 3]                     # (L, 1)
        b_l2 = w[0:1, Fdim + 3:Fdim + 4]                   # (1, 1)

        # min over features (PyTorch: x.min(dim=1)) -> sublane reduce
        m = jnp.min(xt, axis=0, keepdims=True)             # (1, TB)

        # Folded conv1/conv2/flatten/linear1: single MXU dot, batch in lanes
        z1 = jnp.dot(w_t, xt, preferred_element_type=jnp.float32,
                     precision=jax.lax.Precision.HIGHEST)  # (L, TB)
        z1 = z1 + w_min * m + b_eff

        # LeakyReLU (slope 0.01): max(z, 0.01*z) is exact for slope in (0,1)
        a1 = jnp.maximum(z1, 0.01 * z1)

        # linear2 (L -> 1): VPU multiply + sublane reduce (no M=1 MXU matmul)
        z2 = jnp.sum(a1 * w_l2, axis=0, keepdims=True) + b_l2   # (1, TB)

        # ReLU, lane-dense store
        o_ref[...] = jnp.maximum(z2, 0.0).astype(o_ref.dtype)

    out = pl.pallas_call(
        kernel,
        out_shape=jax.ShapeDtypeStruct((1, B), jnp.float32),
        grid=grid,
        in_specs=[
            pl.BlockSpec((Fdim, TB), lambda i: (0, i)),    # x^T tile (pipelined)
            pl.BlockSpec((L, Fp4), lambda i: (0, 0)),      # packed params (resident)
        ],
        out_specs=pl.BlockSpec((1, TB), lambda i: (0, i)),
        compiler_params=pltpu.CompilerParams(
            dimension_semantics=("parallel",),             # shards across v7x TCs
            vmem_limit_bytes=32 * 1024 * 1024,
        ),
    )(x_t, wp)
    return out


def approx_net_forward(x, wp, *, tb_max=_TB_MAX):
    """x: (B, F) float32, wp from fold_params. Returns (B, 1).

    Pays one transpose pass over x to present the batch lane-dense to the
    kernel; callers that can produce (F, B) data should use
    approx_net_forward_t directly and avoid it.
    """
    out_t = approx_net_forward_t(x.T, wp, tb_max=tb_max)   # (1, B)
    return out_t.reshape(x.shape[0], 1)


def approx_net_apply(x, params, *, tb_max=_TB_MAX):
    """Convenience: fold + forward (prefer precomputing fold_params once)."""
    return approx_net_forward(x, fold_params(params), tb_max=tb_max)


# ---------------------------------------------------------------------------
# Pure-JAX reference (direct transcription of the PyTorch forward)
# ---------------------------------------------------------------------------
def approx_net_reference(x, params):
    min_value = jnp.min(x, axis=1)                                 # (B,)
    xb = x[:, None, :]                                             # (B, 1, F)
    h1 = jnp.einsum('oc,bcf->bof', params["conv1_w"][:, :, 0], xb) \
        + params["conv1_b"][None, :, None]
    h2 = jnp.einsum('oc,bcf->bof', params["conv2_w"][:, :, 0], h1) \
        + params["conv2_b"][None, :, None]
    flat = h2.reshape(x.shape[0], -1)
    feat = jnp.concatenate([flat, min_value[:, None]], axis=1)
    z1 = feat @ params["linear1_w"].T + params["linear1_b"]
    a1 = jnp.where(z1 > 0, z1, 0.01 * z1)
    z2 = a1 @ params["linear2_w"].T + params["linear2_b"]
    return jnp.maximum(z2, 0.0)


# ---------------------------------------------------------------------------
# Main
# ---------------------------------------------------------------------------
if __name__ == "__main__":
    # Approx_net(input_channels=1, input_features=16,
    #            conv_filters_1=4, conv_filters_2=8, linear_features=32)
    B, F = 8, 16
    C1, C2, L = 4, 8, 32

    key = jax.random.PRNGKey(0)
    keys = jax.random.split(key, 10)

    params = {
        "conv1_w": jax.random.uniform(keys[0], (C1, 1, 1), jnp.float32, -1.0, 1.0),
        "conv1_b": jax.random.uniform(keys[1], (C1,), jnp.float32, -1.0, 1.0),
        "conv2_w": jax.random.uniform(keys[2], (C2, C1, 1), jnp.float32, -0.5, 0.5),
        "conv2_b": jax.random.uniform(keys[3], (C2,), jnp.float32, -0.5, 0.5),
        "linear1_w": jax.random.uniform(keys[4], (L, C2 * F + 1), jnp.float32, -0.1, 0.1),
        "linear1_b": jax.random.uniform(keys[5], (L,), jnp.float32, -0.1, 0.1),
        "linear2_w": jax.random.uniform(keys[6], (1, L), jnp.float32, -0.2, 0.2),
        "linear2_b": jax.random.uniform(keys[7], (1,), jnp.float32, -0.2, 0.2),
    }
    x = jax.random.normal(keys[8], (B, F), jnp.float32)

    # One-time fold per parameter set; jitted forward for the hot path.
    wp = fold_params(params)
    forward = jax.jit(approx_net_forward, static_argnames=("tb_max",))

    out = jax.block_until_ready(forward(x, wp))
    ref = approx_net_reference(x, params)
    assert out.shape == (B, 1)
    assert jnp.allclose(out, ref, atol=1e-4, rtol=1e-4), (out, ref)

    # Also exercise the multi-block path with a ragged last batch tile
    # (no wrapper-side padding; Pallas masks the out-of-bounds block).
    B2 = 2001
    x2 = jax.random.normal(keys[9], (B2, F), jnp.float32)
    out2 = jax.block_until_ready(forward(x2, wp))
    ref2 = approx_net_reference(x2, params)
    assert out2.shape == (B2, 1)
    assert jnp.allclose(out2, ref2, atol=1e-4, rtol=1e-4)

    print("KERNEL_OK")
</pallas_src>

<mosaic_0001>
module attributes {stable_mosaic.version = 11 : i64} {
  func.func @kernel(%arg0: i32, %arg1: memref<16x8xf32, #tpu.memory_space<vmem>>, %arg2: memref<32x20xf32, #tpu.memory_space<vmem>>, %arg3: memref<1x8xf32, #tpu.memory_space<vmem>>) attributes {dimension_semantics = [#tpu.dimension_semantics<parallel>], iteration_bounds = array<i64: 1>, scalar_prefetch = 0 : i64, scratch_operands = 0 : i64, tpu.core_type = #tpu.core_type<tc>, window_params = [{transform_indices = @transform_0, window_bounds = array<i64: 16, 8>}, {pipeline_mode = #tpu.pipeline_mode<synchronous>, transform_indices = @transform_1, window_bounds = array<i64: 32, 20>}, {transform_indices = @transform_2, window_bounds = array<i64: 1, 8>}]} {
    %c0 = arith.constant 0 : index
    %c0_0 = arith.constant 0 : index
    %0 = vector.load %arg1[%c0, %c0_0] : memref<16x8xf32, #tpu.memory_space<vmem>>, vector<16x8xf32>
    %c0_1 = arith.constant 0 : index
    %c0_2 = arith.constant 0 : index
    %1 = vector.load %arg2[%c0_1, %c0_2] : memref<32x20xf32, #tpu.memory_space<vmem>>, vector<32x20xf32>
    %2 = vector.extract_strided_slice %1 {offsets = [0, 0], sizes = [32, 16], strides = [1, 1]} : vector<32x20xf32> to vector<32x16xf32>
    %3 = vector.extract_strided_slice %1 {offsets = [0, 16], sizes = [32, 1], strides = [1, 1]} : vector<32x20xf32> to vector<32x1xf32>
    %4 = vector.extract_strided_slice %1 {offsets = [0, 17], sizes = [32, 1], strides = [1, 1]} : vector<32x20xf32> to vector<32x1xf32>
    %5 = vector.extract_strided_slice %1 {offsets = [0, 18], sizes = [32, 1], strides = [1, 1]} : vector<32x20xf32> to vector<32x1xf32>
    %6 = vector.extract_strided_slice %1 {offsets = [0, 19], sizes = [1, 1], strides = [1, 1]} : vector<32x20xf32> to vector<1x1xf32>
    %cst = arith.constant dense<0x7F800000> : vector<8xf32>
    %7 = vector.multi_reduction <minimumf>, %0, %cst [0] : vector<16x8xf32> to vector<8xf32>
    %8 = vector.shape_cast %7 : vector<8xf32> to vector<1x8xf32>
    %cst_3 = arith.constant dense<0.000000e+00> : vector<32x8xf32>
    %9 = tpu.matmul %2, %0, %cst_3 {dimension_numbers = #tpu.dot_dimension_numbers<[1], [0], [0], [1], [0, 0, 1, 1], [], []>, precision = #tpu.contract_precision<fp32>} : vector<32x16xf32>, vector<16x8xf32>, vector<32x8xf32> -> vector<32x8xf32>
    %10 = vector.broadcast %3 : vector<32x1xf32> to vector<32x8xf32>
    %11 = vector.broadcast %8 : vector<1x8xf32> to vector<32x8xf32>
    %12 = arith.mulf %10, %11 : vector<32x8xf32>
    %13 = arith.addf %9, %12 : vector<32x8xf32>
    %14 = vector.broadcast %4 : vector<32x1xf32> to vector<32x8xf32>
    %15 = arith.addf %13, %14 : vector<32x8xf32>
    %cst_4 = arith.constant 0.00999999977 : f32
    %16 = vector.broadcast %cst_4 : f32 to vector<32x8xf32>
    %17 = arith.mulf %16, %15 : vector<32x8xf32>
    %18 = arith.maximumf %15, %17 : vector<32x8xf32>
    %19 = vector.broadcast %5 : vector<32x1xf32> to vector<32x8xf32>
    %20 = arith.mulf %18, %19 : vector<32x8xf32>
    %cst_5 = arith.constant dense<0.000000e+00> : vector<8xf32>
    %21 = vector.multi_reduction <add>, %20, %cst_5 [0] : vector<32x8xf32> to vector<8xf32>
    %22 = vector.shape_cast %21 : vector<8xf32> to vector<1x8xf32>
    %23 = vector.broadcast %6 : vector<1x1xf32> to vector<1x8xf32>
    %24 = arith.addf %22, %23 : vector<1x8xf32>
    %cst_6 = arith.constant 0.000000e+00 : f32
    %25 = vector.broadcast %cst_6 : f32 to vector<1x8xf32>
    %26 = arith.maximumf %24, %25 : vector<1x8xf32>
    %c0_7 = arith.constant 0 : index
    %c0_8 = arith.constant 0 : index
    %27 = vector.load %arg3[%c0_7, %c0_8] : memref<1x8xf32, #tpu.memory_space<vmem>>, vector<1x8xf32>
    tpu.vector_store %arg3[%c0_7, %c0_8], %26 {strides = array<i32>} : memref<1x8xf32, #tpu.memory_space<vmem>>, vector<1x8xf32>,
    return
  }
  func.func @transform_0(%arg0: i32) -> (i32, i32) {
    %c0_i32 = arith.constant 0 : i32
    %c0_i32_0 = arith.constant 0 : i32
    return %c0_i32, %arg0 : i32, i32
  }
  func.func @transform_1(%arg0: i32) -> (i32, i32) {
    %c0_i32 = arith.constant 0 : i32
    %c0_i32_0 = arith.constant 0 : i32
    %c0_i32_1 = arith.constant 0 : i32
    return %c0_i32, %c0_i32_0 : i32, i32
  }
  func.func @transform_2(%arg0: i32) -> (i32, i32) {
    %c0_i32 = arith.constant 0 : i32
    %c0_i32_0 = arith.constant 0 : i32
    return %c0_i32, %arg0 : i32, i32
  }
}

</mosaic_0001>

<bundles_post_ra>
// kernel: approx_net_forward.1
= control target key start
LH: loop header
LB: loop body
LE: loop exit
PB: predicated region body
PF: predicated region fallthrough
CT: control target
= control target key end

     0   :  { %vm52_vm0 = vcmask 130048   ;;  %v912_v9 = vmov 16   ;;  %s1037_s0 = inlined_call_operand.vmem [shape: f32[16,8], index: 0, kind: input, shape index: {}]   ;;  %s1038_s1 = inlined_call_operand.vmem [shape: f32[32,20], index: 1, kind: input, shape index: {}]   ;;  %s1039_s2 = inlined_call_operand.hbm [shape: f32[1,8], index: 2, kind: output, shape index: {}]  }
   0x1   :  { %v12_v0 = vld [vmem:[%s1037_s0] sm:$0xff]  ;;  %v13_v1 = vld [vmem:[%s1037_s0 + $0x8] sm:$0xff]  ;;  %v952_v7 = vld [vmem:[%s1038_s1 + $0x10] sm:$0xff]  ;;  %882 = vset.pattern.permute.xlu1 %v912_v9  ;;  %881 = vset.pattern.permute.xlu0 %v912_v9 }
   0x2   :  { %v941_v2 = vld [vmem:[%s1038_s1] sm:$0xff]  ;;  %v62_v3 = vand.u32 4294901760, %v12_v0  ;;  %v65_v4 = vand.u32 4294901760, %v13_v1  ;;  %v947_v6 = vld [vmem:[%s1038_s1 + $0x8] sm:$0xff]  ;;  %v957_v8 = vld [vmem:[%s1038_s1 + $0x18] sm:$0xff]  ;;  %v57_v12 = vsel %vm52_vm0, %v952_v7, 0  ;;  %40 = vperm.xlu1 %882, %v952_v7  }
   0x3   :  { %v53_v5 = vsel %vm52_vm0, %v941_v2, 0  ;;  %v55_v11 = vsel %vm52_vm0, %v947_v6, 0  ;;  %v59_v13 = vsel %vm52_vm0, %v957_v8, 0  ;;  %30 = vperm.xlu0 %881, %v941_v2  }
   0x4   :  { %v959_v10 = vand.u32 4294901760, %v53_v5 }
   0x5   :  { %7 = vsyncpa [#allocation3], 0  ;;  %v828_v14 = vpack.c.bf16 %v65_v4, %v62_v3  ;;  %v966_v15 = vand.u32 4294901760, %v55_v11  ;;  %v968_v16 = vand.u32 4294901760, %v57_v12  ;;  %v170_v17 = vsub.f32 %v12_v0, %v62_v3  ;;  %s916_s1 = smov [#allocation2]  }
   0x6   :  { %v971_v18 = vsub.f32 %v53_v5, %v959_v10  ;;  %v177_v19 = vsub.f32 %v13_v1, %v65_v4  ;;  %v973_v20 = vand.u32 4294901760, %v59_v13  ;;  %45 = vperm.xlu1 %882, %v957_v8   ;;  %vm18_vm1 = vcmask 64512   ;;  %s724_s20 = sshll.u32 %s916_s1, 4  ;;  %s725_s20 = int_to_ptr.vmem [resolvable:$true] %s724_s20 }
   0x7   :  { %841 = vmatprep.subr.bf16.mxu0 %v828_v14  ;;  %829 = vmatprep.subr.bf16.mxu1 %v828_v14  ;;  %v976_v21 = vsub.f32 %v55_v11, %v966_v15  ;;  %v979_v22 = vsub.f32 %v57_v12, %v968_v16  ;;  %v171_v23 = vand.u32 4294901760, %v170_v17  ;;  %v19_v37 = vsel %vm18_vm1, %v12_v0, inf  ;;  %s888_s21 = scalar_lea.vmem %s725_s20, 16  ;;  %s892_s22 = scalar_lea.vmem %s725_s20, 32 }
   0x8   :  { %843 = vmatpush3.bf16.msra.mxu0 %v828_v14  ;;  %v130_v24 = vand.u32 4294901760, %v971_v18  ;;  %831 = vmatpush3.bf16.msra.mxu1 %v828_v14  ;;  %v178_v25 = vand.u32 4294901760, %v177_v19  ;;  %v983_v26 = vsub.f32 %v59_v13, %v973_v20  ;;  %v20_v41 = vsel %vm18_vm1, %v13_v1, inf  ;;  %p889_p0 = scmp.ne.s32.totalorder %s725_s20, %s888_s21  ;;  %p893_p1 = scmp.lt.s32.totalorder %s725_s20, %s725_s20 }
   0x9   :  { %v140_v27 = vand.u32 4294901760, %v976_v21  ;;  %v150_v28 = vand.u32 4294901760, %v979_v22  ;;  %v172_v29 = vsub.f32 %v170_v17, %v171_v23  ;;  %35 = vperm.xlu0 %881, %v947_v6   ;;  %v913_v44 = vmov 17   ;;  %p894_p2 = scmp.lt.s32.totalorder %s892_s22, %s888_s21 }
   0xa   :  { %802 = vmatprep.mubr.f32.mxu0 %v130_v24  ;;  %v131_v30 = vsub.f32 %v971_v18, %v130_v24  ;;  %v179_v31 = vsub.f32 %v177_v19, %v178_v25  ;;  %v160_v32 = vand.u32 4294901760, %v983_v26  ;;  %v844_v33 = vpack.c.bf16 %v178_v25, %v171_v23  ;;  %884 = vset.pattern.permute.xlu1 %v913_v44 }
   0xb   :  { %803 = vmatmul.mubr.f32.vlgmr.msra.gmra.mrb[0].mxu0 %v140_v27  ;;  %v141_v34 = vsub.f32 %v976_v21, %v140_v27  ;;  %v173_v35 = vand.u32 4294901760, %v172_v29  ;;  %v151_v36 = vsub.f32 %v979_v22, %v150_v28  ;;  %v21_v45 = vmin.f32 %v19_v37, %v20_v41  ;;  %654 = vperm.xlu1 %884, %v947_v6   ;;  %p895_p3 = por %p894_p2, %p893_p1 }
   0xc   :  { %v132_v38 = vand.u32 4294901760, %v131_v30  ;;  %805 = vmatprep.mubr.f32.mxu0 %v150_v28  ;;  %v180_v39 = vand.u32 4294901760, %v179_v31  ;;  %845 = vmatprep.subr.bf16.mxu0 %v844_v33  ;;  %v161_v40 = vsub.f32 %v983_v26, %v160_v32  ;;  %v836_v47 = vpack.c.bf16 %v177_v19, %v170_v17 }
   0xd   :  { %v142_v42 = vand.u32 4294901760, %v141_v34  ;;  %847 = vmatpush3.bf16.msra.mxu0 %v844_v33  ;;  %v152_v43 = vand.u32 4294901760, %v151_v36  ;;  %883 = vset.pattern.permute.xlu0 %v913_v44  ;;  %v914_v49 = vmov 18   ;;  %v915_v50 = vmov 19   ;;  %p896_p4 = pnand %p895_p3, %p889_p0 }
   0xe   :  { %772 = vmatprep.mubr.f32.mxu1 %v132_v38  ;;  %v832_v46 = vpack.c.bf16 %v180_v39, %v173_v35  ;;  %849 = vmatprep.subr.bf16.mxu0 %v828_v14  ;;  %v162_v48 = vand.u32 4294901760, %v161_v40  ;;  %v22_v51 = vrot.slane %v21_v45, 4  ;;  %vm716_vm2 = vcmask 57344  }
   0xf   :  { %773 = vmatmul.mubr.f32.vlgmr.msra.gmra.mrb[0].mxu1 %v142_v42  ;;  %806 = vmatmul.mubr.f32.gmra.mrb[2].mxu0 %v160_v32 }
  0x10   :  { %833 = vmatprep.subr.bf16.mxu1 %v832_v46  ;;  %775 = vmatprep.mubr.f32.mxu1 %v152_v43  ;;  %v23_v53 = vmin.f32 %v21_v45, %v22_v51 }
  0x11   :  { %835 = vmatpush3.bf16.msra.mxu1 %v832_v46  ;;  %812 = vmatprep.mubr.f32.mxu0 %v959_v10 }
  0x12   :  { %837 = vmatprep.subr.bf16.mxu1 %v836_v47  ;;  %658 = vperm.xlu1 %884, %v952_v7   ;;  %v24_v54 = vrot.slane %v23_v53, 2 }
  0x13   :  { %776 = vmatmul.mubr.f32.gmra.mrb[2].mxu1 %v162_v48  ;;  %813 = vmatmul.mubr.f32.vlgmr.msra.gmra.mrb[0].mxu0 %v966_v15 }
  0x14   :  { %782 = vmatprep.mubr.f32.mxu1 %v959_v10  ;;  %815 = vmatprep.mubr.f32.mxu0 %v968_v16  ;;  %v25_v57 = vmin.f32 %v23_v53, %v24_v54 }
  0x15   :  { %851 = vmatpush3.bf16.msra.mxu0 %v828_v14  ;;  %650 = vperm.xlu0 %883, %v941_v2  }
  0x16   :  { %885 = vset.pattern.permute.xlu1 %v914_v49  ;;  %v26_v60 = vrot.slane %v25_v57, 1 }
  0x17   :  { %783 = vmatmul.mubr.f32.vlgmr.msra.gmra.mrb[0].mxu1 %v966_v15  ;;  %816 = vmatmul.mubr.f32.gmra.mrb[2].mxu0 %v973_v20 }
  0x18   :  { %839 = vmatpush3.bf16.msra.mxu1 %v836_v47  ;;  %785 = vmatprep.mubr.f32.mxu1 %v968_v16  ;;  %v27_v62 = vmin.f32 %v25_v57, %v26_v60 }
  0x19   :  { %822 = vmatprep.mubr.f32.mxu0 %v959_v10  ;;  %662 = vperm.xlu0 %883, %v957_v8  }
  0x1a   :  { %678 = vperm.xlu1 %885, %v941_v2  }
  0x1b   :  { %786 = vmatmul.mubr.f32.gmra.mrb[2].mxu1 %v973_v20  ;;  %823 = vmatmul.mubr.f32.vlgmr.msra.gmra.mrb[0].mxu0 %v966_v15 }
  0x1c   :  { %792 = vmatprep.mubr.f32.mxu1 %v971_v18  ;;  %825 = vmatprep.mubr.f32.mxu0 %v968_v16 }
  0x1d   :  { %886 = vset.pattern.permute.xlu0 %v914_v49 }
  0x1e   :  { %682 = vperm.xlu0 %886, %v947_v6   ;;  %686 = vperm.xlu1 %885, %v952_v7  }
  0x1f   :  { %793 = vmatmul.mubr.f32.vlgmr.msra.gmra.mrb[0].mxu1 %v976_v21  ;;  %826 = vmatmul.mubr.f32.gmra.mrb[2].mxu0 %v973_v20 }
  0x20   :  { %795 = vmatprep.mubr.f32.mxu1 %v979_v22 }
  0x22   :  { %887 = vset.pattern.permute.xlu0 %v915_v50  ;;  %690 = vperm.xlu1 %885, %v957_v8  }
  0x23   :  { %796 = vmatmul.mubr.f32.gmra.mrb[2].mxu1 %v983_v26  ;;  %711 = vperm.xlu0 %887, %v941_v2  }
  0x81   :  { %v41_v52 = vpop.permute.xlu1 %40 }
  0x82   :  { %v31_v56 = vpop.permute.xlu0 %30  ;;  %v50_v13 = vmul.f32 %v41_v52, %v27_v62 }
  0x83   :  { %v48_v4 = vmul.f32 %v31_v56, %v27_v62 }
  0x85   :  { %v46_v55 = vpop.permute.xlu1 %45 }
  0x86   :  { %v51_v10 = vmul.f32 %v46_v55, %v27_v62 }
  0x88   :  { %v36_v59 = vpop.permute.xlu0 %35 }
  0x89   :  { %v49_v3 = vmul.f32 %v36_v59, %v27_v62 }
  0x8a   :  { %v655_v58 = vpop.permute.xlu1 %654 }
  0x91   :  { %v659_v0 = vpop.permute.xlu1 %658 }
  0x94   :  { %v651_v1 = vpop.permute.xlu0 %650 }
  0x98   :  { %v663_v16 = vpop.permute.xlu0 %662 }
  0x99   :  { %v679_v12 = vpop.permute.xlu1 %678 }
  0x9d   :  { %v683_v26 = vpop.permute.xlu0 %682  ;;  %v687_v28 = vpop.permute.xlu1 %686 }
  0xa1   :  { %v691_v40 = vpop.permute.xlu1 %690 }
  0xa2   :  { %v712_v53 = vpop.permute.xlu0 %711 }
  0xee   :  { %v824_v61 = vpop.f32.mrb[0].mxu0 }
  0xef   :  { %v627_v63 = vpop.f32.mrb[1].mxu0 }
  0xf2   :  { %v794_v5 = vpop.f32.mrb[0].mxu1  ;;  %v827_v6 = vpop.f32.mrb[2].mxu0 }
  0xf3   :  { %v852_v2 = vadd.f32 %v794_v5, %v49_v3  ;;  %v339_v7 = vpop.f32.mrb[1].mxu1  ;;  %v639_v8 = vpop.f32.mrb[3].mxu0 }
  0xf4   :  { %v854_v9 = vadd.f32 %v339_v7, %v48_v4 }
  0xf5   :  { %v853_v11 = vadd.f32 %v852_v2, %v824_v61 }
  0xf6   :  { %v855_v14 = vadd.f32 %v854_v9, %v627_v63  ;;  %v797_v15 = vpop.f32.mrb[2].mxu1 }
  0xf7   :  { %v856_v17 = vadd.f32 %v797_v15, %v51_v10  ;;  %v353_v18 = vpop.f32.mrb[3].mxu1  ;;  %v666_v19 = vadd.f32 %v853_v11, %v655_v58 }
  0xf8   :  { %v665_v20 = vadd.f32 %v855_v14, %v651_v1  ;;  %v858_v21 = vadd.f32 %v353_v18, %v50_v13 }
  0xf9   :  { %v857_v22 = vadd.f32 %v856_v17, %v827_v6  ;;  %v670_v23 = vmul.f32 0.01, %v666_v19 }
  0xfa   :  { %v669_v24 = vmul.f32 0.01, %v665_v20  ;;  %v859_v25 = vadd.f32 %v858_v21, %v639_v8 }
  0xfb   :  { %v668_v27 = vadd.f32 %v857_v22, %v663_v16  ;;  %v674_v29 = vmax.f32 %v666_v19, %v670_v23 }
  0xfc   :  { %v673_v30 = vmax.f32 %v665_v20, %v669_v24  ;;  %v667_v31 = vadd.f32 %v859_v25, %v659_v0 }
  0xfd   :  { %v672_v32 = vmul.f32 0.01, %v668_v27  ;;  %v694_v33 = vmul.f32 %v683_v26, %v674_v29 }
  0xfe   :  { %v693_v34 = vmul.f32 %v679_v12, %v673_v30  ;;  %v671_v35 = vmul.f32 0.01, %v667_v31 }
  0xff   :  { %v676_v36 = vmax.f32 %v668_v27, %v672_v32  ;;  %v698_v37 = vsel %vm18_vm1, %v694_v33, 0.0 }
 0x100   :  { %v697_v38 = vsel %vm18_vm1, %v693_v34, 0.0  ;;  %v675_v39 = vmax.f32 %v667_v31, %v671_v35 }
 0x101   :  { %v699_v41 = vadd.f32 %v698_v37, %v697_v38  ;;  %v696_v43 = vmul.f32 %v691_v40, %v676_v36 }
 0x102   :  { %v695_v42 = vmul.f32 %v687_v28, %v675_v39 }
 0x103   :  { %v702_v46 = vsel %vm18_vm1, %v696_v43, 0.0 }
 0x104   :  { %v700_v44 = vsel %vm18_vm1, %v695_v42, 0.0 }
 0x105   :  { %v701_v45 = vadd.f32 %v700_v44, %v699_v41 }
 0x107   :  { %v703_v47 = vadd.f32 %v702_v46, %v701_v45 }
 0x109   :  { %v704_v48 = vrot.slane %v703_v47, 4 }
 0x10b   :  { %v705_v49 = vadd.f32 %v704_v48, %v703_v47 }
 0x10d   :  { %v706_v50 = vrot.slane %v705_v49, 2 }
 0x10f   :  { %v707_v51 = vadd.f32 %v706_v50, %v705_v49 }
 0x111   :  { %v708_v52 = vrot.slane %v707_v51, 1 }
 0x113   :  { %v709_v54 = vadd.f32 %v708_v52, %v707_v51 }
 0x115   :  { %v714_v55 = vadd.f32 %v712_v53, %v709_v54 }
 0x117   :  { %v715_v56 = vmax.f32 %v714_v55, 0.0 }
 0x119   :  { %717 = vst.msk [vmem:[#allocation2] sm:$0x1] %vm716_vm2, %v715_v56 }
 0x11a   :  { %899 = shalt.err (!%p896_p4)
}
 0x11b   :  { %s900_s25 = scalar_lea.hbm %s1039_s2, 16 }
 0x11c   :  { %p901_p5 = scmp.ne.s32.totalorder %s1039_s2, %s900_s25  ;;  %p904_p6 = scmp.lt.u32.totalorder %s900_s25, %s1039_s2 }
 0x11e   :  { %p906_p7 = pnand %p904_p6, %p901_p5 }
 0x120   :  { %909 = shalt.err (!%p906_p7)
}
 0x121   :  { %727 = dma.vmem_to_hbm [thread:$0]  %s725_s20, 16, %s1039_s2, [#allocation3]  }
 0x122   :  { %910 = dma.done.wait [#allocation3], 16  }
 0x123   :  { %911 = vsyncadd [#allocation3], 4294967280 }
 0x124   :  { %731 = vsyncpa [#allocation3], 1 }

</bundles_post_ra>
